<compile_context>
chip_gen: v6e
topology: v6e:2x2x1
jax: 0.10.0
libtpu: 0.0.40
codegen_flags: <defaults>
</compile_context>

<pallas_src>
import jax
import jax.numpy as jnp
from jax.experimental import pallas as pl
from jax.experimental.pallas import tpu as pltpu


def _round_up(x, m):
    return ((x + m - 1) // m) * m


def _inv1x1_kernel(w_ref, z_ref, o_ref):
    # w_ref: (C, C), z_ref: (C, T_TILE), o_ref: (C, T_TILE)  (batch squeezed)
    o_ref[...] = jnp.dot(
        w_ref[...], z_ref[...], preferred_element_type=jnp.float32
    ).astype(o_ref.dtype)


def invertible_1x1_conv(z, W, *, t_tile=2048, compute_dtype=None):
    """Forward pass of Invertible1x1Conv (reverse=False).

    z: (B, C, T) float32, W: (C, C) float32 orthogonal weight (det == +1).
    compute_dtype: None keeps the input dtype (f32); jnp.bfloat16 halves HBM
      bytes on this bandwidth-bound kernel (accumulation stays f32).
    Returns (out, log_det_W) matching the PyTorch module.
    """
    B, C, T = z.shape
    out_dtype = z.dtype

    if compute_dtype is not None:
        z = z.astype(compute_dtype)
        W = W.astype(compute_dtype)
        out_dtype = compute_dtype

    # Lane-dense time tile: clamp to the 128-rounded sequence length so small
    # inputs are not over-padded, then pad T to a tile multiple (no hard
    # divisibility requirement on n_of_groups).
    t_tile = max(128, min(int(t_tile), _round_up(T, 128)))
    T_pad = _round_up(T, t_tile)
    if T_pad != T:
        z = jnp.pad(z, ((0, 0), (0, 0), (0, T_pad - T)))

    grid = (B, T_pad // t_tile)

    out = pl.pallas_call(
        _inv1x1_kernel,
        out_shape=jax.ShapeDtypeStruct((B, C, T_pad), out_dtype),
        grid_spec=pltpu.PrefetchScalarGridSpec(
            num_scalar_prefetch=0,
            grid=grid,
            in_specs=[
                # Tiny (C, C) weight; same resident block for every grid point.
                pl.BlockSpec((C, C), lambda b, t: (0, 0)),
                # One batch element (squeezed out of the kernel ref), one wide
                # time tile.
                pl.BlockSpec((pl.Squeezed(), C, t_tile), lambda b, t: (b, 0, t)),
            ],
            out_specs=pl.BlockSpec(
                (pl.Squeezed(), C, t_tile), lambda b, t: (b, 0, t)
            ),
        ),
        compiler_params=pltpu.CompilerParams(
            dimension_semantics=("parallel", "parallel"),
        ),
    )(W, z)

    if T_pad != T:
        out = out[:, :, :T]

    # log_det_W = batch_size * n_of_groups * logdet(W).  det(W) == +1 by
    # construction, so logdet == logabsdet; do NOT add log(sign) (it would be
    # NaN if det ever went negative instead of the intended logabsdet).
    _, logabsdet = jnp.linalg.slogdet(W.astype(jnp.float32))
    log_det_W = (B * T) * logabsdet
    return out, log_det_W


def make_weight(c, key):
    """Deterministic init matching the PyTorch module: QR of a normal matrix,
    flip first column if det < 0 so det(W) == +1."""
    A = jax.random.normal(key, (c, c), dtype=jnp.float32)
    Q, _ = jnp.linalg.qr(A)
    detQ = jnp.linalg.det(Q)
    Q = jnp.where(detQ < 0, Q.at[:, 0].set(-Q[:, 0]), Q)
    return Q


if __name__ == "__main__":
    key = jax.random.PRNGKey(0)
    k_w, k_z = jax.random.split(key)

    # n_of_groups deliberately NOT a multiple of 128 to exercise the pad/slice path.
    B, C, T = 2, 8, 200  # batch, channels (group_size), n_of_groups
    W = make_weight(C, k_w)
    z = jax.random.normal(k_z, (B, C, T), dtype=jnp.float32)

    ref = jnp.einsum("ij,bjt->bit", W, z)
    ref_logdet = (B * T) * jnp.linalg.slogdet(W)[1]

    # f32 path.
    out, log_det_W = invertible_1x1_conv(z, W)
    out = jax.block_until_ready(out)
    log_det_W = jax.block_until_ready(log_det_W)
    assert out.shape == (B, C, T)
    assert jnp.allclose(out, ref, atol=1e-4, rtol=1e-4), "f32 kernel mismatch"
    assert jnp.allclose(log_det_W, ref_logdet, atol=1e-4), "logdet mismatch"

    # bf16 I/O path (halves HBM bytes on this bandwidth-bound kernel).
    out_bf16, _ = invertible_1x1_conv(z, W, compute_dtype=jnp.bfloat16)
    out_bf16 = jax.block_until_ready(out_bf16)
    assert out_bf16.dtype == jnp.bfloat16
    assert jnp.allclose(
        out_bf16.astype(jnp.float32), ref, atol=5e-2, rtol=5e-2
    ), "bf16 kernel mismatch"

    print("KERNEL_OK")
</pallas_src>

<mosaic_0001>
module attributes {stable_mosaic.version = 11 : i64} {
  func.func @_inv1x1_kernel(%arg0: i32, %arg1: i32, %arg2: memref<8x8xf32, #tpu.memory_space<vmem>>, %arg3: memref<1x8x256xf32, #tpu.memory_space<vmem>>, %arg4: memref<1x8x256xf32, #tpu.memory_space<vmem>>) attributes {dimension_semantics = [#tpu.dimension_semantics<parallel>, #tpu.dimension_semantics<parallel>], iteration_bounds = array<i64: 2, 1>, scalar_prefetch = 0 : i64, scratch_operands = 0 : i64, tpu.core_type = #tpu.core_type<tc>, window_params = [{pipeline_mode = #tpu.pipeline_mode<synchronous>, transform_indices = @transform_0, window_bounds = array<i64: 8, 8>}, {transform_indices = @transform_1, window_bounds = array<i64: 1, 8, 256>}, {transform_indices = @transform_2, window_bounds = array<i64: 1, 8, 256>}]} {
    %c0 = arith.constant 0 : index
    %c0_0 = arith.constant 0 : index
    %0 = vector.load %arg2[%c0, %c0_0] : memref<8x8xf32, #tpu.memory_space<vmem>>, vector<8x8xf32>
    %c0_1 = arith.constant 0 : index
    %c0_2 = arith.constant 0 : index
    %c0_3 = arith.constant 0 : index
    %1 = vector.load %arg3[%c0_1, %c0_2, %c0_3] : memref<1x8x256xf32, #tpu.memory_space<vmem>>, vector<1x8x256xf32>
    %2 = vector.shape_cast %1 : vector<1x8x256xf32> to vector<8x256xf32>
    %cst = arith.constant dense<0.000000e+00> : vector<8x256xf32>
    %3 = tpu.matmul %0, %2, %cst {dimension_numbers = #tpu.dot_dimension_numbers<[1], [0], [0], [1], [0, 0, 1, 1], [], []>} : vector<8x8xf32>, vector<8x256xf32>, vector<8x256xf32> -> vector<8x256xf32>
    %c0_4 = arith.constant 0 : index
    %c0_5 = arith.constant 0 : index
    %c0_6 = arith.constant 0 : index
    %4 = vector.load %arg4[%c0_4, %c0_5, %c0_6] : memref<1x8x256xf32, #tpu.memory_space<vmem>>, vector<1x8x256xf32>
    %5 = vector.shape_cast %4 : vector<1x8x256xf32> to vector<8x256xf32>
    %6 = vector.shape_cast %3 : vector<8x256xf32> to vector<1x8x256xf32>
    tpu.vector_store %arg4[%c0_4, %c0_5, %c0_6], %6 {strides = array<i32>} : memref<1x8x256xf32, #tpu.memory_space<vmem>>, vector<1x8x256xf32>,
    return
  }
  func.func @transform_0(%arg0: i32, %arg1: i32) -> (i32, i32) {
    %c0_i32 = arith.constant 0 : i32
    %c0_i32_0 = arith.constant 0 : i32
    %c0_i32_1 = arith.constant 0 : i32
    return %c0_i32, %c0_i32_0 : i32, i32
  }
  func.func @transform_1(%arg0: i32, %arg1: i32) -> (i32, i32, i32) {
    %c0_i32 = arith.constant 0 : i32
    %c0_i32_0 = arith.constant 0 : i32
    return %arg0, %c0_i32, %arg1 : i32, i32, i32
  }
  func.func @transform_2(%arg0: i32, %arg1: i32) -> (i32, i32, i32) {
    %c0_i32 = arith.constant 0 : i32
    %c0_i32_0 = arith.constant 0 : i32
    return %arg0, %c0_i32, %arg1 : i32, i32, i32
  }
}

</mosaic_0001>

<bundles_post_ra>
// kernel: tpu_custom_call.1
= control target key start
LH: loop header
LB: loop body
LE: loop exit
PB: predicated region body
PF: predicated region fallthrough
CT: control target
= control target key end

     0   :  { %7 = vsyncpa [#allocation3], 0  ;;  %s806_s0 = inlined_call_operand.hbm [shape: f32[8,8], index: 0, kind: input, shape index: {}]   ;;  %s807_s1 = inlined_call_operand.hbm [shape: f32[2,8,256], index: 1, kind: input, shape index: {}]   ;;  %s808_s2 = inlined_call_operand.hbm [shape: f32[2,8,256], index: 2, kind: output, shape index: {}]  }
   0x1   :  { %8 = vsyncpa [#allocation6], 0 }
   0x2   :  { %10 = vsyncpa [#allocation6 + $0x1], 0 }
   0x3   :  { %11 = vsyncpa [#allocation4], 0 }
   0x4   :  { %13 = vsyncpa [#allocation4 + $0x1], 0  ;;  %s639_s9 = smov 0   ;;  %s641_s10 = smov 0  }
   0x5   :  { %s643_s11 = smov 0   ;;  %s645_s12 = smov 0  }
   0x6   :  { %s647_s13 = smov 0   ;;  %s649_s14 = smov 0  }
   0x7 LB: > { %s386_s15 = sadd.s32 4294967295, %s618_s14   ;;  %s387_s16 = sadd.s32 4294967294, %s618_s14   ;;  %s618_s14 = sphi %s649_s14, %s19_s14   ;;  %s614_s13 = sphi %s647_s13, %s825_s13   ;;  %s610_s12 = sphi %s645_s12, %s824_s12   ;;  %s606_s11 = sphi %s643_s11, %s823_s11   ;;  %s602_s10 = sphi %s641_s10, %s822_s10   ;;  %s598_s9 = sphi %s639_s9, %s821_s9  }
   0x8   : > { %p74_p0 = scmp.ne.s32.totalorder %s602_s10, %s598_s9  ;;  %p673_p1 = scmp.eq.s32.totalorder %s386_s15, 0 }
   0x9   : > { %p677_p2 = scmp.eq.s32.totalorder %s386_s15, 1  ;;  %p106_p3 = scmp.eq.s32.totalorder %s387_s16, 1 }
   0xa   : > { %p683_p4 = por %p673_p1, %p74_p0  ;;  %p388_p5 = scmp.ge.s32.totalorder %s618_s14, 1 }
   0xb   : > { %p688_p6 = por %p106_p3, %p74_p0  ;;  %p113_p7 = scmp.lt.s32.totalorder %s618_s14, 3 }
   0xc   : > { %s812_s19 = scalar_select %p683_p4, 1, 0 }
   0xd   : > { %s813_s20 = scalar_select %p688_p6, 1, 0 }
   0xe   : > { %p693_p8 = pnand %p388_p5, %p113_p7  ;;  %s620_s22 = smov [#allocation2]  }
   0xf   : > { %s126_s23 = sshll.u32 %s620_s22, 4  ;;  %s31_s25 = sadd.s32 1, %s614_s13  ;;  %s127_s23 = int_to_ptr.vmem [resolvable:$true] %s126_s23 }
  0x10   : > { %p414_p10 = pneg %p693_p8  ;;  %s61_s26 = sadd.s32 1, %s606_s11 }
  0x11   : > { %p33_p12 = scmp.ge.s32.totalorder %s31_s25, 2  ;;  %s491_s27 = scalar_lea.vmem %s127_s23, 128 }
  0x12   : > { %p702_p11 = pnand %p414_p10, %p673_p1  ;;  %p492_p0 = scmp.ne.s32.totalorder %s127_s23, %s491_s27 }
  0x13   : > { %p499_p7 = scmp.lt.s32.totalorder %s127_s23, %s127_s23  ;;  %p500_p6 = scmp.lt.s32.totalorder %s491_s27, %s491_s27 }
  0x14   : > { %p482_p13 = pneg %p702_p11 }
  0x15   : > { %p501_p9 = por %p500_p6, %p499_p7 }
  0x16   : > { %p494_p3 = pnand %p492_p0, %p482_p13 }
  0x18   : > { %p495_p5 = pneg %p494_p3 }
  0x1a   : > { %p502_p4 = pnand %p501_p9, %p495_p5 }
  0x1c   : > { %505 = shalt.err (!%p502_p4)
}
  0x1d   : > { %417 = dma.hbm_to_vmem [thread:$0]  (!%p702_p11), %s806_s0, 128, %s127_s23, [#allocation3]  }
  0x1e   : > { %s827_s25 = smov (%p33_p12, %s31_s25), 0  ;;  %p68_p6 = scmp.ne.s32.totalorder %s606_s11, %s602_s10 }
  0x1f   : > { %p69_p4 = scmp.eq.s32.totalorder %s618_s14, 0  ;;  %s56_s30 = ssub.s32 %s614_s13, %s827_s25 }
  0x20   : > { %p427_p9 = scmp.lt.s32.totalorder %s618_s14, 2  ;;  %p59_p10 = scmp.eq.s32.totalorder %s56_s30, 0 }
  0x21   : > { %p70_p13 = por %p69_p4, %p68_p6  ;;  %p725_p0 = por %p677_p2, %p68_p6 }
  0x22   : > { %s137_s4 = sand.u32 1, %s606_s11   ;;  %s404_s7 = sshll.u32 %s614_s13, 8 }
  0x23   : > { %s731_s5 = scalar_select %p59_p10, %s606_s11, %s61_s26  }
  0x24   : > { %s391_s6 = sshll.u32 %s137_s4, 4  ;;  %s149_s16 = scalar_lea.hbm %s807_s1, %s404_s7 }
  0x25   : > { %s141_s22 = scalar_lea.vmem [#allocation5], %s391_s6  ;;  %p737_p11 = pnand %p427_p9, %p70_p13 }
  0x26   : > { %s151_s23 = sshll.u32 %s141_s22, 4  ;;  %s138_s18 = scalar_lea.sflag [#allocation6], %s137_s4  ;;  %s152_s23 = int_to_ptr.vmem [resolvable:$true] %s151_s23 }
  0x27   : > { %p508_p2 = pneg %p737_p11  ;;  %s519_s27 = scalar_lea.vmem %s152_s23, 256 }
  0x28   : > { %p520_p12 = scmp.ne.s32.totalorder %s152_s23, %s519_s27  ;;  %s621_s26 = smov [#allocation5]  }
  0x29   : > { %s524_s28 = sshll.u32 %s621_s26, 4  ;;  %s525_s28 = int_to_ptr.vmem [resolvable:$false] %s524_s28 }
  0x2a   : > { %p522_p3 = pnand %p520_p12, %p508_p2  ;;  %s526_s29 = scalar_lea.vmem %s525_s28, 512 }
  0x2b   : > { %p527_p7 = scmp.lt.s32.totalorder %s152_s23, %s525_s28  ;;  %p528_p6 = scmp.lt.s32.totalorder %s526_s29, %s519_s27 }
  0x2c   : > { %p523_p5 = pneg %p522_p3 }
  0x2d   : > { %p529_p4 = por %p528_p6, %p527_p7 }
  0x2f   : > { %p530_p10 = pnand %p529_p4, %p523_p5 }
  0x31   : > { %533 = shalt.err (!%p530_p10)
}
  0x32   : > { %421 = dma.hbm_to_vmem [thread:$0]  (!%p737_p11), %s149_s16, 256, %s152_s23, %s138_s18  }
  0x33   : > { %160 = sbr.rel (%p693_p8) target bundleno = 272 (0x110), region = 28 }
  0x38   : > { %585 = dma.done.wait (%p673_p1), [#allocation3], 128  }
  0x39   : > { %587 = vsyncadd (%p673_p1), [#allocation3], 4294967168  ;;  %s752_s30 = sand.u32 1, %s602_s10   ;;  %p818_p9 = scmp.ne.s32.totalorder %s812_s19, 0 }
  0x3a   : > { %s396_s4 = sshll.u32 %s752_s30, 4  ;;  %s167_s6 = scalar_lea.sflag [#allocation6], %s752_s30 }
  0x3b   : > { %s170_s7 = scalar_lea.vmem [#allocation5], %s396_s4 }
  0x3c   : > { %589 = dma.done.wait (%p818_p9), %s167_s6, 256  }
  0x3d   : > { %591 = vsyncadd (%p818_p9), %s167_s6, 4294967040  ;;  %v622_v0 = vmov 0.0   ;;  %v195_v1 = vld [vmem:[%s170_s7 + $0x8] sm:$0xff]  ;;  %v194_v2 = vld [vmem:[%s170_s7] sm:$0xff]  ;;  %vm196_vm0 = vcmask 64512   ;;  %s190_s17 = scalar_lea.vmem [#allocation7], %s396_s4 }
  0x3e   : > { %264 = vmatprep.mubr.f32.mxu0 %v622_v0  ;;  %v193_v3 = vld [vmem:[#allocation2] sm:$0xff]  ;;  %230 = vmatprep.subr.mxu0 %v195_v1  ;;  %s290_s21 = sshll.u32 %s190_s17, 4  ;;  %s405_s8 = sshll.u32 %s610_s12, 8  ;;  %s761_s21 = int_to_ptr.vmem [resolvable:$true] %s290_s21 }
  0x3f   : > { %231 = vmatpush1.msra.mxu0 %v194_v2  ;;  %s288_s16 = scalar_lea.hbm %s808_s2, %s405_s8  ;;  %s274_s22 = scalar_lea.sflag [#allocation4], %s752_s30 }
  0x40   : > { %398 = vmatmul.mubr.msk.f32.vlgmr.msra.gmra.mxu0 %vm196_vm0, %v193_v3  ;;  %s534_s23 = scalar_lea.vmem %s761_s21, 256  ;;  %s623_s12 = smov [#allocation7]  }
  0x41   : > { %p535_p1 = scmp.ne.s32.totalorder %s761_s21, %s534_s23  ;;  %s538_s24 = sshll.u32 %s623_s12, 4  ;;  %s539_s24 = int_to_ptr.vmem [resolvable:$false] %s538_s24 }
  0x42   : > { %s540_s18 = scalar_lea.vmem %s539_s24, 512  ;;  %p541_p11 = scmp.lt.s32.totalorder %s761_s21, %s539_s24 }
  0x43   : > { %p536_p8 = pnand %p535_p1, %p725_p0  ;;  %p542_p2 = scmp.lt.s32.totalorder %s540_s18, %s534_s23 }
  0x45   : > { %p537_p13 = pneg %p536_p8  ;;  %p543_p12 = por %p542_p2, %p541_p11 }
  0x47   : > { %p544_p3 = pnand %p543_p12, %p537_p13 }
 0x100   : > { %v266_v4 = vpop.f32.mrf.mxu0 }
 0x101   : > { %271 = vst [vmem:[%s190_s17] sm:$0xff] %v266_v4 }
 0x102   : > { %v268_v5 = vpop.f32.mrf.mxu0 }
 0x103   : > { %272 = vst [vmem:[%s190_s17 + $0x8] sm:$0xff] %v268_v5 }
 0x104   : > { %547 = shalt.err (!%p544_p3)
}
 0x105   : > { %s548_s27 = scalar_lea.hbm %s288_s16, 256  ;;  %s552_s29 = scalar_lea.hbm %s808_s2, 512 }
 0x106   : > { %p549_p5 = scmp.ne.s32.totalorder %s288_s16, %s548_s27  ;;  %p553_p4 = scmp.lt.s32.totalorder %s288_s16, %s808_s2 }
 0x107   : > { %p554_p10 = scmp.lt.s32.totalorder %s552_s29, %s548_s27 }
 0x108   : > { %p550_p7 = pnand %p549_p5, %p725_p0 }
 0x109   : > { %p555_p9 = por %p554_p10, %p553_p4 }
 0x10a   : > { %p551_p6 = pneg %p550_p7 }
 0x10c   : > { %p556_p1 = pnand %p555_p9, %p551_p6 }
 0x10e   : > { %559 = shalt.err (!%p556_p1)
}
 0x10f   : > { %412 = dma.vmem_to_hbm [thread:$0]  (%p725_p0), %s761_s21, 256, %s288_s16, %s274_s22  }
 0x110 PF: > { %s302_s6 = sand.u32 1, %s598_s9   ;;  %p819_p8 = scmp.ne.s32.totalorder %s813_s20, 0 }
 0x111   : > { %p820_p13 = scmp.ge.s32.totalorder %s618_s14, 2  ;;  %s303_s7 = scalar_lea.sflag [#allocation4], %s302_s6 }
 0x113   : > { %p423_p11 = pnand %p820_p13, %p819_p8 }
 0x115   : > { %p424_p2 = pneg %p423_p11 }
 0x117   : > { %593 = dma.done.wait (%p424_p2), %s303_s7, 256  }
 0x118   : > { %595 = vsyncadd (%p424_p2), %s303_s7, 4294967040  ;;  %s19_s14 = sadd.s32 1, %s618_s14   ;;  %s821_s9 = smov %s602_s10 }
 0x119   : > { %p16_p12 = scmp.ge.s32.totalorder %s19_s14, 4   ;;  %s822_s10 = smov %s606_s11 }
 0x11a   : > { %s823_s11 = smov %s731_s5  ;;  %s824_s12 = smov %s614_s13 }
 0x11b   : > { %s825_s13 = smov %s827_s25  ;;  %18 = sbr.rel (!%p16_p12) target bundleno = 7 (0x7), region = 78 }
 0x120   :  { %308 = vsyncpa [#allocation3], 1 }
 0x121   :  { %310 = vsyncpa [#allocation3 + $0x1], 1 }
 0x122   :  { %311 = vsyncpa [#allocation6], 1 }
 0x123   :  { %313 = vsyncpa [#allocation6 + $0x1], 1 }
 0x124   :  { %314 = vsyncpa [#allocation4], 1 }
 0x125   :  { %316 = vsyncpa [#allocation4 + $0x1], 1 }

</bundles_post_ra>
